<compile_context>
chip_gen: v6e
topology: v6e:2x2x1
jax: 0.10.0
libtpu: 0.0.40
codegen_flags: <defaults>
</compile_context>

<pallas_src>
import functools

import jax
import jax.numpy as jnp
import numpy as np
from jax.experimental import pallas as pl
from jax.experimental.pallas import tpu as pltpu

LANE = 128   # TPU lane width   (last dim)
SUBLANE = 8  # TPU sublane width (second-to-last dim)


def _round_up(n, m):
    return ((n + m - 1) // m) * m


def _feature_pad(n):
    # 128 (one lane tile) for tiny dims; 256-aligned beyond that so v6e/v7x's
    # 2x256x256 MXU is not half-idle on real hidden sizes.
    if n <= LANE:
        return LANE
    return _round_up(n, 2 * LANE)


def _pad2d(a, rows, cols):
    a = jnp.asarray(a, jnp.float32)
    return jnp.zeros((rows, cols), jnp.float32).at[: a.shape[0], : a.shape[1]].set(a)


def _vmem_limit_bytes(tb, inp, hp, outp):
    bf16, f32 = 2, 4
    resident = (inp * hp + hp * hp + hp * outp) * bf16 + (8 * hp + 8 * outp) * f32
    streamed = 2 * (tb * inp + tb * outp) * f32          # double-buffered x / out
    scratch = 6 * tb * hp * f32                          # h1/h2 + epilogue temporaries
    est = 2 * (resident + streamed + scratch)            # 2x headroom
    return int(min(max(est, 32 * 1024 * 1024), 64 * 1024 * 1024))


def _mlp2ln_kernel(x_ref, w1_ref, w2_ref, w3_ref, vec_ref, b3_ref, o_ref,
                   *, hidden_size, eps):
    """Fused fc1 -> ln1 -> relu -> fc2 -> ln2 -> relu -> fc3 on one batch tile."""
    inv_h = 1.0 / float(hidden_size)

    vecs = vec_ref[...]                                   # (8, Hp) f32
    b1, g1, bt1 = vecs[0:1, :], vecs[1:2, :], vecs[2:3, :]
    b2, g2, bt2 = vecs[3:4, :], vecs[4:5, :], vecs[5:6, :]

    def ln_relu(h, gamma, beta):
        # Padded lanes of `h` are exactly zero, so full-lane sums == true sums.
        mean = jnp.sum(h, axis=-1, keepdims=True) * inv_h
        mean_sq = jnp.sum(h * h, axis=-1, keepdims=True) * inv_h
        var = jnp.maximum(mean_sq - mean * mean, 0.0)     # clamp one-pass cancellation
        rstd = jax.lax.rsqrt(var + eps)                   # EUP
        a = gamma * rstd                                  # zero on padded lanes
        b = beta - mean * a                               # zero on padded lanes
        return jnp.maximum(h * a + b, 0.0)

    x = x_ref[...].astype(jnp.bfloat16)                   # bf16 MXU input, f32 accum
    h1 = jnp.dot(x, w1_ref[...], preferred_element_type=jnp.float32) + b1
    h1 = ln_relu(h1, g1, bt1)
    h2 = jnp.dot(h1.astype(jnp.bfloat16), w2_ref[...],
                 preferred_element_type=jnp.float32) + b2
    h2 = ln_relu(h2, g2, bt2)
    o_ref[...] = (jnp.dot(h2.astype(jnp.bfloat16), w3_ref[...],
                          preferred_element_type=jnp.float32) + b3_ref[0:1, :])


def _prepare_params(params):
    """Pad / pack / cast all parameters once; call at init, not per forward."""
    w1, b1, g1, bt1, w2, b2, g2, bt2, w3, b3 = params
    IN, H = w1.shape
    OUT = w3.shape[1]
    INp, Hp, OUTp = _feature_pad(IN), _feature_pad(H), _feature_pad(OUT)

    w1p = _pad2d(w1, INp, Hp).astype(jnp.bfloat16)
    w2p = _pad2d(w2, Hp, Hp).astype(jnp.bfloat16)
    w3p = _pad2d(w3, Hp, OUTp).astype(jnp.bfloat16)

    vecs = jnp.zeros((8, Hp), jnp.float32)                # rows: b1,g1,bt1,b2,g2,bt2
    for r, v in enumerate((b1, g1, bt1, b2, g2, bt2)):
        v = jnp.asarray(v, jnp.float32)
        vecs = vecs.at[r, : v.shape[0]].set(v)
    b3p = jnp.zeros((8, OUTp), jnp.float32).at[0, :OUT].set(
        jnp.asarray(b3, jnp.float32))

    dims = dict(IN=IN, H=H, OUT=OUT, INp=INp, Hp=Hp, OUTp=OUTp)
    return (w1p, w2p, w3p, vecs, b3p), dims


def make_mlp2ln(params, eps=1e-5):
    """Returns a jitted forward(x) closure over pre-padded, cached parameters."""
    (w1p, w2p, w3p, vecs, b3p), dims = _prepare_params(params)
    IN, H, OUT = dims["IN"], dims["H"], dims["OUT"]
    INp, Hp, OUTp = dims["INp"], dims["Hp"], dims["OUTp"]

    kernel = functools.partial(_mlp2ln_kernel, hidden_size=H, eps=eps)

    def forward(x):
        B = x.shape[0]
        TB = min(_round_up(max(B, SUBLANE), SUBLANE), 256)   # modest tile: fits v7x 64 MiB
        Bp = _round_up(B, TB)
        xp = jnp.zeros((Bp, INp), jnp.float32).at[:B, :IN].set(x.astype(jnp.float32))

        out_padded = pl.pallas_call(
            kernel,
            out_shape=jax.ShapeDtypeStruct((Bp, OUTp), jnp.float32),
            grid=(Bp // TB,),
            in_specs=[
                pl.BlockSpec((TB, INp), lambda i: (i, 0)),    # x tile (streamed)
                pl.BlockSpec((INp, Hp), lambda i: (0, 0)),    # w1 (bf16, resident)
                pl.BlockSpec((Hp, Hp), lambda i: (0, 0)),     # w2 (bf16, resident)
                pl.BlockSpec((Hp, OUTp), lambda i: (0, 0)),   # w3 (bf16, resident)
                pl.BlockSpec((8, Hp), lambda i: (0, 0)),      # packed b1,g1,bt1,b2,g2,bt2
                pl.BlockSpec((8, OUTp), lambda i: (0, 0)),    # b3
            ],
            out_specs=pl.BlockSpec((TB, OUTp), lambda i: (i, 0)),
            compiler_params=pltpu.CompilerParams(
                dimension_semantics=("parallel",),
                vmem_limit_bytes=_vmem_limit_bytes(TB, INp, Hp, OUTp),
            ),
        )(xp, w1p, w2p, w3p, vecs, b3p)
        return out_padded[:B, :OUT]

    return jax.jit(forward)


def mlp2ln_reference(x, params, eps=1e-5):
    w1, b1, g1, bt1, w2, b2, g2, bt2, w3, b3 = params

    def ln(h, gamma, beta):
        mu = jnp.mean(h, axis=-1, keepdims=True)
        var = jnp.mean((h - mu) ** 2, axis=-1, keepdims=True)
        return (h - mu) / jnp.sqrt(var + eps) * gamma + beta

    h = jax.nn.relu(ln(x @ w1 + b1, g1, bt1))
    h = jax.nn.relu(ln(h @ w2 + b2, g2, bt2))
    return h @ w3 + b3


if __name__ == "__main__":
    key = jax.random.PRNGKey(0)
    B, IN, H, OUT = 2, 64, 32, 16   # batch=2, input=64, hidden=32, output=16

    ks = jax.random.split(key, 12)
    x = jax.random.normal(ks[0], (B, IN), jnp.float32)
    w1 = jax.random.normal(ks[1], (IN, H), jnp.float32) / np.sqrt(IN)
    b1 = 0.1 * jax.random.normal(ks[2], (H,), jnp.float32)
    g1 = 1.0 + 0.1 * jax.random.normal(ks[3], (H,), jnp.float32)
    bt1 = 0.1 * jax.random.normal(ks[4], (H,), jnp.float32)
    w2 = jax.random.normal(ks[5], (H, H), jnp.float32) / np.sqrt(H)
    b2 = 0.1 * jax.random.normal(ks[6], (H,), jnp.float32)
    g2 = 1.0 + 0.1 * jax.random.normal(ks[7], (H,), jnp.float32)
    bt2 = 0.1 * jax.random.normal(ks[8], (H,), jnp.float32)
    w3 = jax.random.normal(ks[9], (H, OUT), jnp.float32) / np.sqrt(H)
    b3 = 0.1 * jax.random.normal(ks[10], (OUT,), jnp.float32)

    params = (w1, b1, g1, bt1, w2, b2, g2, bt2, w3, b3)

    forward = make_mlp2ln(params)          # pads/packs/casts params exactly once
    out = jax.block_until_ready(forward(x))

    ref = jax.block_until_ready(mlp2ln_reference(x, params))
    assert out.shape == (B, OUT), out.shape
    # Tolerance loosened vs. a pure-f32 reference because matmul inputs are
    # intentionally bf16 (f32 accumulation); expected error is well under 1e-2.
    np.testing.assert_allclose(np.asarray(out), np.asarray(ref),
                               rtol=3e-2, atol=3e-2)

    print("KERNEL_OK")
</pallas_src>

<mosaic_0001>
module attributes {stable_mosaic.version = 11 : i64} {
  func.func @_mlp2ln_kernel(%arg0: i32, %arg1: memref<8x128xf32, #tpu.memory_space<vmem>>, %arg2: memref<128x128xbf16, #tpu.memory_space<vmem>>, %arg3: memref<128x128xbf16, #tpu.memory_space<vmem>>, %arg4: memref<128x128xbf16, #tpu.memory_space<vmem>>, %arg5: memref<8x128xf32, #tpu.memory_space<vmem>>, %arg6: memref<8x128xf32, #tpu.memory_space<vmem>>, %arg7: memref<8x128xf32, #tpu.memory_space<vmem>>) attributes {dimension_semantics = [#tpu.dimension_semantics<parallel>], iteration_bounds = array<i64: 1>, scalar_prefetch = 0 : i64, scratch_operands = 0 : i64, tpu.core_type = #tpu.core_type<tc>, window_params = [{transform_indices = @transform_0, window_bounds = array<i64: 8, 128>}, {pipeline_mode = #tpu.pipeline_mode<synchronous>, transform_indices = @transform_1, window_bounds = array<i64: 128, 128>}, {pipeline_mode = #tpu.pipeline_mode<synchronous>, transform_indices = @transform_2, window_bounds = array<i64: 128, 128>}, {pipeline_mode = #tpu.pipeline_mode<synchronous>, transform_indices = @transform_3, window_bounds = array<i64: 128, 128>}, {pipeline_mode = #tpu.pipeline_mode<synchronous>, transform_indices = @transform_4, window_bounds = array<i64: 8, 128>}, {pipeline_mode = #tpu.pipeline_mode<synchronous>, transform_indices = @transform_5, window_bounds = array<i64: 8, 128>}, {transform_indices = @transform_6, window_bounds = array<i64: 8, 128>}]} {
    %c0 = arith.constant 0 : index
    %c0_0 = arith.constant 0 : index
    %0 = vector.load %arg5[%c0, %c0_0] : memref<8x128xf32, #tpu.memory_space<vmem>>, vector<8x128xf32>
    %1 = vector.extract_strided_slice %0 {offsets = [0, 0], sizes = [1, 128], strides = [1, 1]} : vector<8x128xf32> to vector<1x128xf32>
    %2 = vector.extract_strided_slice %0 {offsets = [1, 0], sizes = [1, 128], strides = [1, 1]} : vector<8x128xf32> to vector<1x128xf32>
    %3 = vector.extract_strided_slice %0 {offsets = [2, 0], sizes = [1, 128], strides = [1, 1]} : vector<8x128xf32> to vector<1x128xf32>
    %4 = vector.extract_strided_slice %0 {offsets = [3, 0], sizes = [1, 128], strides = [1, 1]} : vector<8x128xf32> to vector<1x128xf32>
    %5 = vector.extract_strided_slice %0 {offsets = [4, 0], sizes = [1, 128], strides = [1, 1]} : vector<8x128xf32> to vector<1x128xf32>
    %6 = vector.extract_strided_slice %0 {offsets = [5, 0], sizes = [1, 128], strides = [1, 1]} : vector<8x128xf32> to vector<1x128xf32>
    %c0_1 = arith.constant 0 : index
    %c0_2 = arith.constant 0 : index
    %7 = vector.load %arg1[%c0_1, %c0_2] : memref<8x128xf32, #tpu.memory_space<vmem>>, vector<8x128xf32>
    %8 = arith.truncf %7 : vector<8x128xf32> to vector<8x128xbf16>
    %c0_3 = arith.constant 0 : index
    %c0_4 = arith.constant 0 : index
    %9 = vector.load %arg2[%c0_3, %c0_4] : memref<128x128xbf16, #tpu.memory_space<vmem>>, vector<128x128xbf16>
    %cst = arith.constant dense<0.000000e+00> : vector<8x128xf32>
    %10 = tpu.matmul %8, %9, %cst {dimension_numbers = #tpu.dot_dimension_numbers<[1], [0], [0], [1], [0, 0, 1, 1], [], []>} : vector<8x128xbf16>, vector<128x128xbf16>, vector<8x128xf32> -> vector<8x128xf32>
    %11 = vector.broadcast %1 : vector<1x128xf32> to vector<8x128xf32>
    %12 = arith.addf %10, %11 : vector<8x128xf32>
    %cst_5 = arith.constant dense<0.000000e+00> : vector<8xf32>
    %13 = vector.multi_reduction <add>, %12, %cst_5 [1] : vector<8x128xf32> to vector<8xf32>
    %14 = vector.shape_cast %13 : vector<8xf32> to vector<8x1xf32>
    %cst_6 = arith.constant 3.125000e-02 : f32
    %15 = vector.broadcast %cst_6 : f32 to vector<8x1xf32>
    %16 = arith.mulf %14, %15 : vector<8x1xf32>
    %17 = arith.mulf %12, %12 : vector<8x128xf32>
    %cst_7 = arith.constant dense<0.000000e+00> : vector<8xf32>
    %18 = vector.multi_reduction <add>, %17, %cst_7 [1] : vector<8x128xf32> to vector<8xf32>
    %19 = vector.shape_cast %18 : vector<8xf32> to vector<8x1xf32>
    %cst_8 = arith.constant 3.125000e-02 : f32
    %20 = vector.broadcast %cst_8 : f32 to vector<8x1xf32>
    %21 = arith.mulf %19, %20 : vector<8x1xf32>
    %22 = arith.mulf %16, %16 : vector<8x1xf32>
    %23 = arith.subf %21, %22 : vector<8x1xf32>
    %cst_9 = arith.constant 0.000000e+00 : f32
    %24 = vector.broadcast %cst_9 : f32 to vector<8x1xf32>
    %25 = arith.maximumf %23, %24 : vector<8x1xf32>
    %cst_10 = arith.constant 9.99999974E-6 : f32
    %26 = vector.broadcast %cst_10 : f32 to vector<8x1xf32>
    %27 = arith.addf %25, %26 : vector<8x1xf32>
    %28 = math.rsqrt %27 : vector<8x1xf32>
    %29 = vector.broadcast %2 : vector<1x128xf32> to vector<8x128xf32>
    %30 = vector.broadcast %28 : vector<8x1xf32> to vector<8x128xf32>
    %31 = arith.mulf %29, %30 : vector<8x128xf32>
    %32 = vector.broadcast %16 : vector<8x1xf32> to vector<8x128xf32>
    %33 = arith.mulf %32, %31 : vector<8x128xf32>
    %34 = vector.broadcast %3 : vector<1x128xf32> to vector<8x128xf32>
    %35 = arith.subf %34, %33 : vector<8x128xf32>
    %36 = arith.mulf %12, %31 : vector<8x128xf32>
    %37 = arith.addf %36, %35 : vector<8x128xf32>
    %cst_11 = arith.constant 0.000000e+00 : f32
    %38 = vector.broadcast %cst_11 : f32 to vector<8x128xf32>
    %39 = arith.maximumf %37, %38 : vector<8x128xf32>
    %40 = arith.truncf %39 : vector<8x128xf32> to vector<8x128xbf16>
    %c0_12 = arith.constant 0 : index
    %c0_13 = arith.constant 0 : index
    %41 = vector.load %arg3[%c0_12, %c0_13] : memref<128x128xbf16, #tpu.memory_space<vmem>>, vector<128x128xbf16>
    %cst_14 = arith.constant dense<0.000000e+00> : vector<8x128xf32>
    %42 = tpu.matmul %40, %41, %cst_14 {dimension_numbers = #tpu.dot_dimension_numbers<[1], [0], [0], [1], [0, 0, 1, 1], [], []>} : vector<8x128xbf16>, vector<128x128xbf16>, vector<8x128xf32> -> vector<8x128xf32>
    %43 = vector.broadcast %4 : vector<1x128xf32> to vector<8x128xf32>
    %44 = arith.addf %42, %43 : vector<8x128xf32>
    %cst_15 = arith.constant dense<0.000000e+00> : vector<8xf32>
    %45 = vector.multi_reduction <add>, %44, %cst_15 [1] : vector<8x128xf32> to vector<8xf32>
    %46 = vector.shape_cast %45 : vector<8xf32> to vector<8x1xf32>
    %cst_16 = arith.constant 3.125000e-02 : f32
    %47 = vector.broadcast %cst_16 : f32 to vector<8x1xf32>
    %48 = arith.mulf %46, %47 : vector<8x1xf32>
    %49 = arith.mulf %44, %44 : vector<8x128xf32>
    %cst_17 = arith.constant dense<0.000000e+00> : vector<8xf32>
    %50 = vector.multi_reduction <add>, %49, %cst_17 [1] : vector<8x128xf32> to vector<8xf32>
    %51 = vector.shape_cast %50 : vector<8xf32> to vector<8x1xf32>
    %cst_18 = arith.constant 3.125000e-02 : f32
    %52 = vector.broadcast %cst_18 : f32 to vector<8x1xf32>
    %53 = arith.mulf %51, %52 : vector<8x1xf32>
    %54 = arith.mulf %48, %48 : vector<8x1xf32>
    %55 = arith.subf %53, %54 : vector<8x1xf32>
    %cst_19 = arith.constant 0.000000e+00 : f32
    %56 = vector.broadcast %cst_19 : f32 to vector<8x1xf32>
    %57 = arith.maximumf %55, %56 : vector<8x1xf32>
    %cst_20 = arith.constant 9.99999974E-6 : f32
    %58 = vector.broadcast %cst_20 : f32 to vector<8x1xf32>
    %59 = arith.addf %57, %58 : vector<8x1xf32>
    %60 = math.rsqrt %59 : vector<8x1xf32>
    %61 = vector.broadcast %5 : vector<1x128xf32> to vector<8x128xf32>
    %62 = vector.broadcast %60 : vector<8x1xf32> to vector<8x128xf32>
    %63 = arith.mulf %61, %62 : vector<8x128xf32>
    %64 = vector.broadcast %48 : vector<8x1xf32> to vector<8x128xf32>
    %65 = arith.mulf %64, %63 : vector<8x128xf32>
    %66 = vector.broadcast %6 : vector<1x128xf32> to vector<8x128xf32>
    %67 = arith.subf %66, %65 : vector<8x128xf32>
    %68 = arith.mulf %44, %63 : vector<8x128xf32>
    %69 = arith.addf %68, %67 : vector<8x128xf32>
    %cst_21 = arith.constant 0.000000e+00 : f32
    %70 = vector.broadcast %cst_21 : f32 to vector<8x128xf32>
    %71 = arith.maximumf %69, %70 : vector<8x128xf32>
    %72 = arith.truncf %71 : vector<8x128xf32> to vector<8x128xbf16>
    %c0_22 = arith.constant 0 : index
    %c0_23 = arith.constant 0 : index
    %73 = vector.load %arg4[%c0_22, %c0_23] : memref<128x128xbf16, #tpu.memory_space<vmem>>, vector<128x128xbf16>
    %cst_24 = arith.constant dense<0.000000e+00> : vector<8x128xf32>
    %74 = tpu.matmul %72, %73, %cst_24 {dimension_numbers = #tpu.dot_dimension_numbers<[1], [0], [0], [1], [0, 0, 1, 1], [], []>} : vector<8x128xbf16>, vector<128x128xbf16>, vector<8x128xf32> -> vector<8x128xf32>
    %c0_25 = arith.constant 0 : index
    %c0_26 = arith.constant 0 : index
    %75 = vector.load %arg6[%c0_25, %c0_26] : memref<8x128xf32, #tpu.memory_space<vmem>>, vector<1x128xf32>
    %76 = vector.broadcast %75 : vector<1x128xf32> to vector<8x128xf32>
    %77 = arith.addf %74, %76 : vector<8x128xf32>
    %c0_27 = arith.constant 0 : index
    %c0_28 = arith.constant 0 : index
    %78 = vector.load %arg7[%c0_27, %c0_28] : memref<8x128xf32, #tpu.memory_space<vmem>>, vector<8x128xf32>
    tpu.vector_store %arg7[%c0_27, %c0_28], %77 {strides = array<i32>} : memref<8x128xf32, #tpu.memory_space<vmem>>, vector<8x128xf32>,
    return
  }
  func.func @transform_0(%arg0: i32) -> (i32, i32) {
    %c0_i32 = arith.constant 0 : i32
    %c0_i32_0 = arith.constant 0 : i32
    return %arg0, %c0_i32 : i32, i32
  }
  func.func @transform_1(%arg0: i32) -> (i32, i32) {
    %c0_i32 = arith.constant 0 : i32
    %c0_i32_0 = arith.constant 0 : i32
    %c0_i32_1 = arith.constant 0 : i32
    return %c0_i32, %c0_i32_0 : i32, i32
  }
  func.func @transform_2(%arg0: i32) -> (i32, i32) {
    %c0_i32 = arith.constant 0 : i32
    %c0_i32_0 = arith.constant 0 : i32
    %c0_i32_1 = arith.constant 0 : i32
    return %c0_i32, %c0_i32_0 : i32, i32
  }
  func.func @transform_3(%arg0: i32) -> (i32, i32) {
    %c0_i32 = arith.constant 0 : i32
    %c0_i32_0 = arith.constant 0 : i32
    %c0_i32_1 = arith.constant 0 : i32
    return %c0_i32, %c0_i32_0 : i32, i32
  }
  func.func @transform_4(%arg0: i32) -> (i32, i32) {
    %c0_i32 = arith.constant 0 : i32
    %c0_i32_0 = arith.constant 0 : i32
    %c0_i32_1 = arith.constant 0 : i32
    return %c0_i32, %c0_i32_0 : i32, i32
  }
  func.func @transform_5(%arg0: i32) -> (i32, i32) {
    %c0_i32 = arith.constant 0 : i32
    %c0_i32_0 = arith.constant 0 : i32
    %c0_i32_1 = arith.constant 0 : i32
    return %c0_i32, %c0_i32_0 : i32, i32
  }
  func.func @transform_6(%arg0: i32) -> (i32, i32) {
    %c0_i32 = arith.constant 0 : i32
    %c0_i32_0 = arith.constant 0 : i32
    return %arg0, %c0_i32 : i32, i32
  }
}

</mosaic_0001>

<bundles_post_ra>
// kernel: forward.1
= control target key start
LH: loop header
LB: loop body
LE: loop exit
PB: predicated region body
PF: predicated region fallthrough
CT: control target
= control target key end

     0   :  { %11 = vsyncpa [#allocation3], 0  ;;  %s774_s0 = inlined_call_operand.vmem [shape: f32[8,128], index: 0, kind: input, shape index: {}]   ;;  %s775_s1 = inlined_call_operand.hbm [shape: bf16[128,128], index: 1, kind: input, shape index: {}]   ;;  %s776_s2 = inlined_call_operand.hbm [shape: bf16[128,128], index: 2, kind: input, shape index: {}]   ;;  %s777_s3 = inlined_call_operand.hbm [shape: bf16[128,128], index: 3, kind: input, shape index: {}]   ;;  %s778_s4 = inlined_call_operand.vmem [shape: f32[8,128], index: 4, kind: input, shape index: {}]   ;;  %s779_s5 = inlined_call_operand.vmem [shape: f32[8,128], index: 5, kind: input, shape index: {}]   ;;  %s780_s6 = inlined_call_operand.vmem [shape: f32[8,128], index: 6, kind: output, shape index: {}]  }
   0x1   :  { %12 = vsyncpa [#allocation5], 0  ;;  %s665_s21 = smov [#allocation4]   ;;  %s666_s23 = smov [#allocation2]  }
   0x2   :  { %s32_s22 = sshll.u32 %s665_s21, 4  ;;  %s20_s24 = sshll.u32 %s666_s23, 4  ;;  %s33_s22 = int_to_ptr.vmem [resolvable:$true] %s32_s22  ;;  %s21_s24 = int_to_ptr.vmem [resolvable:$true] %s20_s24 }
   0x3   :  { %s609_s25 = scalar_lea.vmem %s33_s22, 1024  ;;  %p614_p1 = scmp.lt.s32.totalorder %s33_s22, %s33_s22 }
   0x4   :  { %p610_p0 = scmp.ne.s32.totalorder %s33_s22, %s609_s25  ;;  %p615_p2 = scmp.lt.s32.totalorder %s609_s25, %s609_s25 }
   0x6   :  { %p616_p3 = por %p615_p2, %p614_p1 }
   0x8   :  { %p617_p4 = pnand %p616_p3, %p610_p0 }
   0xa   :  { %620 = shalt.err (!%p617_p4)
}
   0xb   :  { %s667_s26 = smov 64   ;;  %s668_s27 = smov 4  }
   0xc   :  { %38 = dma.hbm_to_vmem [thread:$0]  %s776_s2, 1024, %s33_s22, [#allocation5], %s667_s26, %s667_s26, %s668_s27  }
   0xd   :  { %s629_s30 = scalar_lea.vmem %s21_s24, 1024  ;;  %p634_p6 = scmp.lt.s32.totalorder %s21_s24, %s21_s24 }
   0xe   :  { %p630_p5 = scmp.ne.s32.totalorder %s21_s24, %s629_s30  ;;  %p635_p7 = scmp.lt.s32.totalorder %s629_s30, %s629_s30 }
  0x10   :  { %p636_p8 = por %p635_p7, %p634_p6 }
  0x12   :  { %p637_p9 = pnand %p636_p8, %p630_p5 }
  0x14   :  { %640 = shalt.err (!%p637_p9)
}
  0x15   :  { %26 = dma.hbm_to_vmem [thread:$0]  %s775_s1, 1024, %s21_s24, [#allocation3], %s667_s26, %s667_s26, %s668_s27  }
  0x16   :  { %s669_s9 = smov [#allocation6]  }
  0x17   :  { %s44_s10 = sshll.u32 %s669_s9, 4  ;;  %s45_s10 = int_to_ptr.vmem [resolvable:$true] %s44_s10 }
  0x18   :  { %s649_s11 = scalar_lea.vmem %s45_s10, 1024  ;;  %p654_p11 = scmp.lt.s32.totalorder %s45_s10, %s45_s10 }
  0x19   :  { %p650_p10 = scmp.ne.s32.totalorder %s45_s10, %s649_s11  ;;  %p655_p12 = scmp.lt.s32.totalorder %s649_s11, %s649_s11 }
  0x1b   :  { %p656_p13 = por %p655_p12, %p654_p11 }
  0x1d   :  { %p657_p0 = pnand %p656_p13, %p650_p10 }
  0x1f   :  { %660 = shalt.err (!%p657_p0)
}
  0x20   :  { %50 = dma.hbm_to_vmem [thread:$0]  %s777_s3, 1024, %s45_s10, [#allocation5], %s667_s26, %s667_s26, %s668_s27  }
  0x21   :  { %661 = dma.done.wait [#allocation3], 1024  }
  0x22   :  { %662 = vsyncadd [#allocation3], 4294966272 }
  0x23   :  { %663 = dma.done.wait [#allocation5], 2048  }
  0x24   :  { %664 = vsyncadd [#allocation5], 4294965248  ;;  %v670_v0 = vmov 0.0   ;;  %vm671_vm0 = vmmov 0   ;;  %v573_v1 = vld [vmem:[#allocation2 + $0x38] sm:$0xff]   ;;  %v574_v2 = vld [vmem:[#allocation2 + $0x30] sm:$0xff]   ;;  %v84_v11 = vlaneseq }
  0x25   :  { %506 = vmatprep.subr.bf16.mxu0 %v670_v0  ;;  %522 = vmatprep.mubr.msk.bf16.mxu0 %vm671_vm0, %v670_v0  ;;  %v575_v3 = vld [vmem:[#allocation2 + $0x28] sm:$0xff]   ;;  %v576_v4 = vld [vmem:[#allocation2 + $0x20] sm:$0xff]   ;;  %v577_v5 = vld [vmem:[#allocation2 + $0x18] sm:$0xff]  }
  0x26   :  { %526 = vmatprep.subr.bf16.mxu1 %v670_v0  ;;  %542 = vmatprep.mubr.msk.bf16.mxu1 %vm671_vm0, %v670_v0  ;;  %v578_v6 = vld [vmem:[#allocation2 + $0x10] sm:$0xff]   ;;  %v579_v7 = vld [vmem:[#allocation2 + $0x8] sm:$0xff]   ;;  %v580_v8 = vld [vmem:[#allocation2] sm:$0xff]   ;;  %v735_v12 = vshrl.u32 %v84_v11, 7 }
  0x27   :  { %507 = vmatpush3.bf16.msra.mxu0 %v573_v1  ;;  %v66_v9 = vld [vmem:[%s774_s0] sm:$0xff]  ;;  %v581_v22 = vld [vmem:[#allocation4 + $0x38] sm:$0xff]   ;;  %v582_v23 = vld [vmem:[#allocation4 + $0x30] sm:$0xff]  }
  0x28   :  { %508 = vmatprep.subr.bf16.mxu0 %v670_v0  ;;  %v67_v10 = vpack.c.bf16 %v66_v9, %v66_v9  ;;  %v86_v13 = vsub.s32 0, %v735_v12  ;;  %v741_v14 = vld [vmem:[%s778_s4] sm:$0xff]  ;;  %527 = vmatpush3.bf16.msra.mxu1 %v581_v22  ;;  %v583_v24 = vld [vmem:[#allocation4 + $0x28] sm:$0xff]   ;;  %v585_v26 = vld [vmem:[#allocation4 + $0x18] sm:$0xff]   ;;  %v190_v38 = vsub.s32 1, %v735_v12  ;;  %v196_v40 = vsub.s32 2, %v735_v12 }
  0x29   :  { %528 = vmatprep.subr.bf16.mxu1 %v670_v0  ;;  %v584_v25 = vld [vmem:[#allocation4 + $0x20] sm:$0xff]   ;;  %v586_v27 = vld [vmem:[#allocation4 + $0x10] sm:$0xff]   ;;  %v587_v28 = vld [vmem:[#allocation4 + $0x8] sm:$0xff]   ;;  %v221_v50 = vsub.s32 3, %v735_v12  ;;  %v325_v11 = vsub.s32 4, %v735_v12 }
  0x2a   :  { %v87_v15 = vrot.slane %v741_v14, %v86_v13  ;;  %v588_v29 = vld [vmem:[#allocation4] sm:$0xff]   ;;  %v191_v39 = vrot.slane %v741_v14, %v190_v38  ;;  %v197_v43 = vrot.slane %v741_v14, %v196_v40  ;;  %v589_v58 = vld [vmem:[#allocation6 + $0x38] sm:$0xff]   ;;  %v590_v59 = vld [vmem:[#allocation6 + $0x30] sm:$0xff]  }
  0x2b   :  { %509 = vmatpush3.bf16.msra.mxu0 %v574_v2  ;;  %v222_v51 = vrot.slane %v741_v14, %v221_v50  ;;  %v591_v60 = vld [vmem:[#allocation6 + $0x28] sm:$0xff]   ;;  %v592_v61 = vld [vmem:[#allocation6 + $0x20] sm:$0xff]   ;;  %v593_v62 = vld [vmem:[#allocation6 + $0x18] sm:$0xff]   ;;  %v326_v13 = vrot.slane %v741_v14, %v325_v11 }
  0x2c   :  { %510 = vmatprep.subr.bf16.mxu0 %v670_v0  ;;  %529 = vmatpush3.bf16.msra.mxu1 %v582_v23  ;;  %v594_v63 = vld [vmem:[#allocation6 + $0x10] sm:$0xff]   ;;  %v595_v1 = vld [vmem:[#allocation6 + $0x8] sm:$0xff]   ;;  %v596_v2 = vld [vmem:[#allocation6] sm:$0xff]  }
  0x2d   :  { %530 = vmatprep.subr.bf16.mxu1 %v670_v0 }
  0x2f   :  { %511 = vmatpush3.bf16.msra.mxu0 %v575_v3 }
  0x30   :  { %512 = vmatprep.subr.bf16.mxu0 %v670_v0  ;;  %531 = vmatpush3.bf16.msra.mxu1 %v583_v24  ;;  %v470_v24 = vld [vmem:[%s779_s5] ss:$0 sm:$0xff] }
  0x31   :  { %532 = vmatprep.subr.bf16.mxu1 %v670_v0 }
  0x33   :  { %513 = vmatpush3.bf16.msra.mxu0 %v576_v4 }
  0x34   :  { %514 = vmatprep.subr.bf16.mxu0 %v670_v0  ;;  %533 = vmatpush3.bf16.msra.mxu1 %v584_v25 }
  0x35   :  { %534 = vmatprep.subr.bf16.mxu1 %v670_v0 }
  0x37   :  { %515 = vmatpush3.bf16.msra.mxu0 %v577_v5 }
  0x38   :  { %516 = vmatprep.subr.bf16.mxu0 %v670_v0  ;;  %535 = vmatpush3.bf16.msra.mxu1 %v585_v26 }
  0x39   :  { %536 = vmatprep.subr.bf16.mxu1 %v670_v0 }
  0x3b   :  { %517 = vmatpush3.bf16.msra.mxu0 %v578_v6 }
  0x3c   :  { %518 = vmatprep.subr.bf16.mxu0 %v670_v0  ;;  %537 = vmatpush3.bf16.msra.mxu1 %v586_v27 }
  0x3d   :  { %538 = vmatprep.subr.bf16.mxu1 %v670_v0 }
  0x3f   :  { %519 = vmatpush3.bf16.msra.mxu0 %v579_v7 }
  0x40   :  { %520 = vmatprep.subr.bf16.mxu0 %v670_v0  ;;  %539 = vmatpush3.bf16.msra.mxu1 %v587_v28 }
  0x41   :  { %540 = vmatprep.subr.bf16.mxu1 %v670_v0 }
  0x43   :  { %521 = vmatpush3.bf16.msra.mxu0 %v580_v8 }
  0x44   :  { %546 = vmatprep.subr.bf16.mxu0 %v670_v0  ;;  %541 = vmatpush3.bf16.msra.mxu1 %v588_v29 }
  0x46   :  { %523 = vmatmul.mubr.bf16.vlgmr.msra.gmra.mxu0 %v67_v10 }
  0x47   :  { %562 = vmatprep.mubr.msk.bf16.mxu0 %vm671_vm0, %v670_v0  ;;  %547 = vmatpush3.bf16.msra.mxu0 %v589_v58 }
  0x48   :  { %548 = vmatprep.subr.bf16.mxu0 %v670_v0 }
  0x4b   :  { %549 = vmatpush3.bf16.msra.mxu0 %v590_v59 }
  0x4c   :  { %550 = vmatprep.subr.bf16.mxu0 %v670_v0 }
  0x4f   :  { %551 = vmatpush3.bf16.msra.mxu0 %v591_v60 }
  0x50   :  { %552 = vmatprep.subr.bf16.mxu0 %v670_v0 }
  0x53   :  { %553 = vmatpush3.bf16.msra.mxu0 %v592_v61 }
  0x54   :  { %554 = vmatprep.subr.bf16.mxu0 %v670_v0 }
  0x57   :  { %555 = vmatpush3.bf16.msra.mxu0 %v593_v62 }
  0x58   :  { %556 = vmatprep.subr.bf16.mxu0 %v670_v0 }
  0x5b   :  { %557 = vmatpush3.bf16.msra.mxu0 %v594_v63 }
  0x5c   :  { %558 = vmatprep.subr.bf16.mxu0 %v670_v0 }
  0x5f   :  { %559 = vmatpush3.bf16.msra.mxu0 %v595_v1 }
  0x60   :  { %560 = vmatprep.subr.bf16.mxu0 %v670_v0 }
  0x63   :  { %561 = vmatpush3.bf16.msra.mxu0 %v596_v2 }
 0x106   :  { %v170_v16 = vpop.f32.mrf.mxu0 }
 0x107   :  { %v171_v17 = vadd.f32 %v170_v16, %v87_v15  ;;  %v331_v15 = vsub.s32 5, %v735_v12 }
 0x108   :  { %v524_v18 = vpop.f32.mrf.mxu0 }
 0x109   :  { %176 = vadd.xlane.f32.xlu0 %v171_v17  ;;  %v179_v20 = vmul.f32 %v171_v17, %v171_v17  ;;  %v332_v0 = vrot.slane %v741_v14, %v331_v15 }
 0x10a   :  { %v173_v19 = vpop.f32.mrf.mxu0 }
 0x10c   :  { %v525_v21 = vpop.f32.mrf.mxu0 }
 0x10d   :  { %180 = vadd.xlane.f32.xlu0 %v179_v20 }
 0x192   :  { %v177_v30 = vpop.xlane.xlu0 %176 }
 0x193   :  { %v178_v31 = vmul.f32 0.03125, %v177_v30 }
 0x195   :  { %v183_v33 = vmul.f32 %v178_v31, %v178_v31 }
 0x196   :  { %v181_v32 = vpop.xlane.xlu0 %180 }
 0x197   :  { %v182_v34 = vmul.f32 0.03125, %v181_v32 }
 0x199   :  { %v184_v35 = vsub.f32 %v182_v34, %v183_v33 }
 0x19b   :  { %v185_v36 = vmax.f32 %v184_v35, 0.0 }
 0x19d   :  { %v186_v37 = vadd.f32 1e-05, %v185_v36 }
 0x19f   :  { %597 = vrsqrt.f32 %v186_v37 }
 0x1ac   :  { %v598_v41 = vpop.eup %597 }
 0x1ad   :  { %v192_v42 = vmul.f32 %v598_v41, %v191_v39 }
 0x1af   :  { %v193_v44 = vmul.f32 %v192_v42, %v178_v31  ;;  %v199_v46 = vmul.f32 %v192_v42, %v171_v17 }
 0x1b1   :  { %v198_v45 = vsub.f32 %v197_v43, %v193_v44 }
 0x1b3   :  { %v200_v47 = vadd.f32 %v199_v46, %v198_v45 }
 0x1b5   :  { %v201_v48 = vmax.f32 %v200_v47, 0.0 }
 0x1b7   :  { %v202_v49 = vpack.c.bf16 %v201_v48, %v201_v48 }
 0x1b9   :  { %543 = vmatmul.mubr.bf16.vlgmr.msra.gmra.mxu1 %v202_v49 }
 0x279   :  { %v305_v52 = vpop.f32.mrf.mxu1 }
 0x27a   :  { %v306_v53 = vadd.f32 %v305_v52, %v222_v51 }
 0x27b   :  { %v544_v54 = vpop.f32.mrf.mxu1 }
 0x27c   :  { %311 = vadd.xlane.f32.xlu1 %v306_v53  ;;  %v314_v56 = vmul.f32 %v306_v53, %v306_v53 }
 0x27d   :  { %v308_v55 = vpop.f32.mrf.mxu1 }
 0x27f   :  { %v545_v57 = vpop.f32.mrf.mxu1 }
 0x280   :  { %315 = vadd.xlane.f32.xlu1 %v314_v56 }
 0x305   :  { %v312_v3 = vpop.xlane.xlu1 %311 }
 0x306   :  { %v313_v4 = vmul.f32 0.03125, %v312_v3 }
 0x308   :  { %v318_v6 = vmul.f32 %v313_v4, %v313_v4 }
 0x309   :  { %v316_v5 = vpop.xlane.xlu1 %315 }
 0x30a   :  { %v317_v7 = vmul.f32 0.03125, %v316_v5 }
 0x30c   :  { %v319_v8 = vsub.f32 %v317_v7, %v318_v6 }
 0x30e   :  { %v320_v9 = vmax.f32 %v319_v8, 0.0 }
 0x310   :  { %v321_v10 = vadd.f32 1e-05, %v320_v9 }
 0x312   :  { %599 = vrsqrt.f32 %v321_v10 }
 0x31f   :  { %v600_v16 = vpop.eup %599 }
 0x320   :  { %v327_v17 = vmul.f32 %v600_v16, %v326_v13 }
 0x322   :  { %v328_v18 = vmul.f32 %v327_v17, %v313_v4  ;;  %v334_v20 = vmul.f32 %v327_v17, %v306_v53 }
 0x324   :  { %v333_v19 = vsub.f32 %v332_v0, %v328_v18 }
 0x326   :  { %v335_v21 = vadd.f32 %v334_v20, %v333_v19 }
 0x328   :  { %v336_v22 = vmax.f32 %v335_v21, 0.0 }
 0x32a   :  { %v337_v23 = vpack.c.bf16 %v336_v22, %v336_v22 }
 0x32c   :  { %563 = vmatmul.mubr.bf16.vlgmr.msra.gmra.mxu0 %v337_v23 }
 0x3ec   :  { %v441_v25 = vpop.f32.mrf.mxu0 }
 0x3ed   :  { %v442_v26 = vadd.f32 %v470_v24, %v441_v25 }
 0x3ee   :  { %v564_v27 = vpop.f32.mrf.mxu0 }
 0x3ef   :  { %447 = vst [vmem:[%s780_s6] sm:$0xff] %v442_v26 }
 0x3f0   :  { %v444_v12 = vpop.f32.mrf.mxu0 }
 0x3f2   :  { %v565_v14 = vpop.f32.mrf.mxu0 }
 0x3f3   :  { %452 = vsyncpa [#allocation3], 1 }
 0x3f4   :  { %453 = vsyncpa [#allocation5], 1 }

</bundles_post_ra>
